<compile_context>
chip_gen: v7x
topology: tpu7x:2x2x1
jax: 0.10.0
libtpu: 0.0.40
codegen_flags: <defaults>
</compile_context>

<pallas_src>
import functools

import jax
import jax.numpy as jnp
from jax import lax
from jax.experimental import pallas as pl
from jax.experimental.pallas import tpu as pltpu

BN_EPS = 1e-5
_LANE = 128


def _round_up(x, m):
    return (x + m - 1) // m * m


def _vmem_budget_bytes():
    """Generation-aware scoped-VMEM budget: ~half of physical VMEM.

    v5e/v6e (128 MiB physical) -> 64 MiB; v7x (64 MiB physical) -> 32 MiB.
    Falls back to a conservative 32 MiB if the hardware query is unavailable.
    """
    try:
        cap = int(pltpu.get_tpu_info().vmem_capacity_bytes)
    except Exception:
        cap = 64 * 1024 * 1024
    return max(16 * 1024 * 1024, cap // 2)


def _pick_row_tile(n, d_in, dz, in_bytes, out_bytes, budget):
    """Largest row tile (pow2-ish candidates up to 2048) whose double-buffered
    footprint fits the VMEM budget. Falls back to the full row count."""
    candidates = (2048, 1024, 512, 256, 128, 64, 32, 16, 8)
    divisors = [c for c in candidates if n % c == 0]
    if not divisors:
        # TODO(synk): ragged N (not a multiple of 8) needs masked partial row tiles.
        return n
    for tm in divisors:
        foot = (2 * tm * d_in * in_bytes      # h tile, double-buffered
                + 2 * tm * dz * out_bytes     # out tile, double-buffered
                + d_in * dz * in_bytes        # W^T, single-buffered (Buffered(1))
                + tm * dz * 4                 # f32 z temp
                + (1 << 20))                  # slack for compiler temps
        if foot <= budget:
            return tm
    return divisors[-1]


# --------------------------------------------------------------------------------------
# Pass 1 (batch_norm=True): per-row-tile partial sum / sum-of-squares of z = h @ W^T.
# Per-tile partials (instead of a resident accumulator) keep the row grid axis
# "parallel", so v7x's second TensorCore shares pass 1 as well.
# --------------------------------------------------------------------------------------
def _stats_kernel(h_ref, wt_ref, stats_ref):
    z = jnp.dot(h_ref[...], wt_ref[...], preferred_element_type=jnp.float32)  # [tm, Dz]
    # Per-feature column reductions on the XLU (pass is HBM-bound -> free filler).
    s1 = jnp.sum(z, axis=0, keepdims=True)        # [1, Dz]
    s2 = jnp.sum(z * z, axis=0, keepdims=True)    # [1, Dz]
    stats_ref[...] = jnp.concatenate([s1, s2], axis=0).reshape(1, 2, -1)


# --------------------------------------------------------------------------------------
# Pass 2 (batch_norm=True): z = h @ W^T, folded BN (scale/shift), relu, residual, store.
# --------------------------------------------------------------------------------------
def _apply_bn_kernel(h_ref, wt_ref, scale_ref, shift_ref, o_ref, *, residual):
    z = jnp.dot(h_ref[...], wt_ref[...], preferred_element_type=jnp.float32)
    # Folded BN affine: one mul + one add per element. Linear bias omitted: it is
    # cancelled exactly by the batch-mean subtraction of training-mode BN.
    z = z * scale_ref[...] + shift_ref[...]
    z = jnp.maximum(z, 0.0)
    if residual:
        # Wrapper guarantees the output block width equals d_in on this path.
        z = z + h_ref[...].astype(jnp.float32)
    o_ref[...] = z.astype(o_ref.dtype)


# --------------------------------------------------------------------------------------
# batch_norm=False path: z = h @ W^T + b, relu, residual, store (single pass).
# --------------------------------------------------------------------------------------
def _apply_nobn_kernel(h_ref, wt_ref, b_ref, o_ref, *, residual):
    z = jnp.dot(h_ref[...], wt_ref[...], preferred_element_type=jnp.float32)
    z = z + b_ref[...]
    z = jnp.maximum(z, 0.0)
    if residual:
        z = z + h_ref[...].astype(jnp.float32)
    o_ref[...] = z.astype(o_ref.dtype)


def mlp_layer_forward(h, e, params, *, batch_norm=True, residual=True,
                      dropout=0.0, block_rows=None, compute_dtype=None, g=None):
    """Pallas implementation of MLPLayer.forward. `g` is unused by the reference."""
    del g, dropout
    # TODO(synk): nonzero dropout would need pltpu.prng_seed + pltpu.prng_random_bits
    # masking inside the apply kernels; the reference default (0.0) is identity.

    w = params["W"]                                  # [D_out, D_in], PyTorch orientation
    n, d_in = h.shape
    d_out = w.shape[0]
    do_residual = bool(residual) and (d_in == d_out)

    gamma = params["gamma"].reshape(1, -1).astype(jnp.float32)
    beta = params["beta"].reshape(1, -1).astype(jnp.float32)
    b = params["b"].reshape(1, -1).astype(jnp.float32)

    # One-time wrapper transpose: kernels run a plain NN matmul.
    wt = jnp.transpose(w)                            # [D_in, D_out]

    # Output-width strategy (see header). h itself is never padded.
    pad_out = _round_up(d_out, _LANE) - d_out
    if pad_out and not do_residual:
        wt = jnp.pad(wt, ((0, 0), (0, pad_out)))
        gamma = jnp.pad(gamma, ((0, 0), (0, pad_out)))
        beta = jnp.pad(beta, ((0, 0), (0, pad_out)))
        b = jnp.pad(b, ((0, 0), (0, pad_out)))
        dz = d_out + pad_out
        slice_pad = True
    else:
        dz = d_out
        slice_pad = False

    # Optional bandwidth/precision tradeoff: bf16 operands, f32 MXU accumulation.
    h_mm = h if compute_dtype is None else h.astype(compute_dtype)
    if compute_dtype is not None:
        wt = wt.astype(compute_dtype)

    in_bytes = jnp.dtype(h_mm.dtype).itemsize
    out_bytes = jnp.dtype(h.dtype).itemsize
    budget = _vmem_budget_bytes()
    tm = block_rows if block_rows is not None else _pick_row_tile(
        n, d_in, dz, in_bytes, out_bytes, budget)
    assert n % tm == 0, "row count must be a multiple of the row tile"
    grid = (n // tm,)

    h_spec = pl.BlockSpec((tm, d_in), lambda i: (i, 0))
    # Constant-index blocks: single-buffered (nothing to pipeline; saves VMEM).
    w_spec = pl.BlockSpec((d_in, dz), lambda i: (0, 0), pipeline_mode=pl.Buffered(1))
    vec_spec = pl.BlockSpec((1, dz), lambda i: (0, 0), pipeline_mode=pl.Buffered(1))
    out_spec = pl.BlockSpec((tm, dz), lambda i: (i, 0))

    cparams = pltpu.CompilerParams(
        dimension_semantics=("parallel",),
        vmem_limit_bytes=budget,
    )

    if batch_norm:
        partials = pl.pallas_call(
            _stats_kernel,
            out_shape=jax.ShapeDtypeStruct((grid[0], 2, dz), jnp.float32),
            grid=grid,
            in_specs=[h_spec, w_spec],
            out_specs=pl.BlockSpec((1, 2, dz), lambda i: (i, 0, 0)),
            compiler_params=cparams,
        )(h_mm, wt)

        # Tiny wrapper-side reduction + one-time fold of BN into scale/shift.
        stats = jnp.sum(partials, axis=0)            # [2, dz]
        inv_n = 1.0 / float(n)
        mean = stats[0:1, :] * inv_n
        # E[z^2] - E[z]^2; clamp guards f32 cancellation when |mean| >> std.
        # TODO(synk): a shifted / Welford-partials formulation would harden this for
        # graph-scale N or extreme |mean|/std ratios.
        var = jnp.maximum(stats[1:2, :] * inv_n - mean * mean, 0.0)
        scale = gamma * lax.rsqrt(var + BN_EPS)
        shift = beta - mean * scale

        kernel = functools.partial(_apply_bn_kernel, residual=do_residual)
        out_p = pl.pallas_call(
            kernel,
            out_shape=jax.ShapeDtypeStruct((n, dz), h.dtype),
            grid=grid,
            in_specs=[h_spec, w_spec, vec_spec, vec_spec],
            out_specs=out_spec,
            compiler_params=cparams,
        )(h_mm, wt, scale, shift)
    else:
        kernel = functools.partial(_apply_nobn_kernel, residual=do_residual)
        out_p = pl.pallas_call(
            kernel,
            out_shape=jax.ShapeDtypeStruct((n, dz), h.dtype),
            grid=grid,
            in_specs=[h_spec, w_spec, vec_spec],
            out_specs=out_spec,
            compiler_params=cparams,
        )(h_mm, wt, b)

    out = out_p[:, :d_out] if slice_pad else out_p
    return out, e


def init_params(key, input_dim, output_dim):
    """Deterministic parameter init matching nn.Linear + nn.BatchNorm1d shapes."""
    k_w, k_b = jax.random.split(key)
    bound = 1.0 / jnp.sqrt(input_dim)
    W = jax.random.uniform(k_w, (output_dim, input_dim), jnp.float32, -bound, bound)
    b = jax.random.uniform(k_b, (output_dim,), jnp.float32, -bound, bound)
    gamma = jnp.ones((output_dim,), jnp.float32)   # BN weight
    beta = jnp.zeros((output_dim,), jnp.float32)   # BN bias
    return {"W": W, "b": b, "gamma": gamma, "beta": beta}


def _reference(h, e, params, *, batch_norm=True, residual=True):
    """Pure-JAX reference mirroring the PyTorch forward (training-mode BN)."""
    z = h @ params["W"].T + params["b"]
    if batch_norm:
        mean = z.mean(axis=0, keepdims=True)
        var = ((z - mean) ** 2).mean(axis=0, keepdims=True)
        z = (z - mean) / jnp.sqrt(var + BN_EPS)
        z = z * params["gamma"] + params["beta"]
    z = jnp.maximum(z, 0.0)
    if residual and h.shape[1] == z.shape[1]:
        z = h + z
    return z, e


if __name__ == "__main__":
    key = jax.random.PRNGKey(0)
    k1, k2, k3, k4, k5, k6 = jax.random.split(key, 6)
    TOL = 1e-3

    # Case 1: lane-aligned path (D = 128), explicit multi-tile grid (4 row tiles of 128).
    N, D = 512, 128
    h = jax.random.normal(k1, (N, D), dtype=jnp.float32)
    e = jax.random.normal(k2, (N, 16), dtype=jnp.float32)
    params = init_params(k3, D, D)
    out_h, out_e = mlp_layer_forward(h, e, params, block_rows=128)
    out_h = jax.block_until_ready(out_h)
    ref_h, ref_e = _reference(h, e, params)
    assert jnp.allclose(out_h, ref_h, atol=TOL, rtol=TOL), "case1 (D=128) mismatch"
    assert (out_e == ref_e).all()

    # Case 2: small feature dim with residual (D=32): native-width path (no h padding).
    N2, D2 = 256, 32
    h2 = jax.random.normal(k4, (N2, D2), dtype=jnp.float32)
    params2 = init_params(k5, D2, D2)
    out_h2, _ = mlp_layer_forward(h2, e[:N2], params2)
    out_h2 = jax.block_until_ready(out_h2)
    ref_h2, _ = _reference(h2, e[:N2], params2)
    assert jnp.allclose(out_h2, ref_h2, atol=TOL, rtol=TOL), "case2 (native D) mismatch"

    # Case 3: input_dim != output_dim (residual auto-disabled, padded lane-dense output),
    # BN on and off.
    N3, DIN3, DOUT3 = 256, 32, 48
    h3 = jax.random.normal(k6, (N3, DIN3), dtype=jnp.float32)
    params3 = init_params(jax.random.PRNGKey(7), DIN3, DOUT3)
    out_h3, _ = mlp_layer_forward(h3, e[:N3], params3)
    out_h3 = jax.block_until_ready(out_h3)
    ref_h3, _ = _reference(h3, e[:N3], params3)
    assert jnp.allclose(out_h3, ref_h3, atol=TOL, rtol=TOL), "case3 (no residual) mismatch"

    out_h3b, _ = mlp_layer_forward(h3, e[:N3], params3, batch_norm=False)
    out_h3b = jax.block_until_ready(out_h3b)
    ref_h3b, _ = _reference(h3, e[:N3], params3, batch_norm=False)
    assert jnp.allclose(out_h3b, ref_h3b, atol=TOL, rtol=TOL), "case3 (no BN) mismatch"

    # Case 4: bf16 operand path (bandwidth tradeoff), f32 accumulation — loose tolerance.
    out_h4, _ = mlp_layer_forward(h, e, params, compute_dtype=jnp.bfloat16)
    out_h4 = jax.block_until_ready(out_h4)
    assert jnp.isfinite(out_h4).all()
    assert jnp.allclose(out_h4, ref_h, atol=0.1, rtol=0.1), "case4 (bf16) mismatch"

    print("KERNEL_OK")
</pallas_src>

<mosaic_0001>
module attributes {stable_mosaic.version = 11 : i64} {
  func.func @_stats_kernel(%arg0: i32, %arg1: memref<128x128xf32, #tpu.memory_space<vmem>>, %arg2: memref<128x128xf32, #tpu.memory_space<vmem>>, %arg3: memref<1x2x128xf32, #tpu.memory_space<vmem>>) attributes {dimension_semantics = [#tpu.dimension_semantics<parallel>], iteration_bounds = array<i64: 4>, scalar_prefetch = 0 : i64, scratch_operands = 0 : i64, tpu.core_type = #tpu.core_type<tc>, window_params = [{transform_indices = @transform_0, window_bounds = array<i64: 128, 128>}, {pipeline_mode = #tpu.pipeline_mode<synchronous>, transform_indices = @transform_1, window_bounds = array<i64: 128, 128>}, {transform_indices = @transform_2, window_bounds = array<i64: 1, 2, 128>}]} {
    %c0 = arith.constant 0 : index
    %c0_0 = arith.constant 0 : index
    %0 = vector.load %arg1[%c0, %c0_0] : memref<128x128xf32, #tpu.memory_space<vmem>>, vector<128x128xf32>
    %c0_1 = arith.constant 0 : index
    %c0_2 = arith.constant 0 : index
    %1 = vector.load %arg2[%c0_1, %c0_2] : memref<128x128xf32, #tpu.memory_space<vmem>>, vector<128x128xf32>
    %cst = arith.constant dense<0.000000e+00> : vector<128x128xf32>
    %2 = tpu.matmul %0, %1, %cst {dimension_numbers = #tpu.dot_dimension_numbers<[1], [0], [0], [1], [0, 0, 1, 1], [], []>} : vector<128x128xf32>, vector<128x128xf32>, vector<128x128xf32> -> vector<128x128xf32>
    %cst_3 = arith.constant dense<0.000000e+00> : vector<128xf32>
    %3 = vector.multi_reduction <add>, %2, %cst_3 [0] : vector<128x128xf32> to vector<128xf32>
    %4 = vector.shape_cast %3 : vector<128xf32> to vector<1x128xf32>
    %5 = arith.mulf %2, %2 : vector<128x128xf32>
    %cst_4 = arith.constant dense<0.000000e+00> : vector<128xf32>
    %6 = vector.multi_reduction <add>, %5, %cst_4 [0] : vector<128x128xf32> to vector<128xf32>
    %7 = vector.shape_cast %6 : vector<128xf32> to vector<1x128xf32>
    %8 = tpu.concatenate %4, %7 in 0 : vector<1x128xf32>, vector<1x128xf32> -> vector<2x128xf32>
    %9 = vector.shape_cast %8 : vector<2x128xf32> to vector<1x2x128xf32>
    %c0_5 = arith.constant 0 : index
    %c0_6 = arith.constant 0 : index
    %c0_7 = arith.constant 0 : index
    %10 = vector.load %arg3[%c0_5, %c0_6, %c0_7] : memref<1x2x128xf32, #tpu.memory_space<vmem>>, vector<1x2x128xf32>
    tpu.vector_store %arg3[%c0_5, %c0_6, %c0_7], %9 {strides = array<i32>} : memref<1x2x128xf32, #tpu.memory_space<vmem>>, vector<1x2x128xf32>,
    return
  }
  func.func @transform_0(%arg0: i32) -> (i32, i32) {
    %c0_i32 = arith.constant 0 : i32
    %c0_i32_0 = arith.constant 0 : i32
    return %arg0, %c0_i32 : i32, i32
  }
  func.func @transform_1(%arg0: i32) -> (i32, i32) {
    %c0_i32 = arith.constant 0 : i32
    %c0_i32_0 = arith.constant 0 : i32
    %c0_i32_1 = arith.constant 0 : i32
    return %c0_i32, %c0_i32_0 : i32, i32
  }
  func.func @transform_2(%arg0: i32) -> (i32, i32, i32) {
    %c0_i32 = arith.constant 0 : i32
    %c0_i32_0 = arith.constant 0 : i32
    %c0_i32_1 = arith.constant 0 : i32
    return %arg0, %c0_i32, %c0_i32_0 : i32, i32, i32
  }
}

</mosaic_0001>

<bundles_post_ra>
// kernel: tpu_custom_call.1
= control target key start
LH: loop header
LB: loop body
LE: loop exit
PB: predicated region body
PF: predicated region fallthrough
CT: control target
= control target key end

     0   :  { %7 = vsyncpa [#allocation3], 0  ;;  %s1086_s0 = inlined_call_operand.hbm [shape: f32[512,128], index: 0, kind: input, shape index: {}]   ;;  %s1087_s1 = inlined_call_operand.hbm [shape: f32[128,128], index: 1, kind: input, shape index: {}]   ;;  %s1088_s2 = inlined_call_operand.hbm [shape: f32[4,2,128], index: 2, kind: output, shape index: {}]  }
   0x1   :  { %9 = vsyncpa [#allocation3 + $0x1], 0 }
   0x2   :  { %10 = vsyncpa [#allocation6], 0 }
   0x3   :  { %11 = vsyncpa [#allocation4], 0 }
   0x4   :  { %13 = vsyncpa [#allocation4 + $0x1], 0  ;;  %s871_s9 = smov 0   ;;  %s873_s10 = smov 0  }
   0x5   :  { %s875_s11 = smov 0   ;;  %s877_s12 = smov 0  }
   0x6 LB: > { %s892_s13 = sadd.s32 4294967295, %s849_s12   ;;  %s510_s14 = sadd.s32 4294967294, %s849_s12   ;;  %s849_s12 = sphi %s877_s12, %s1107_s12   ;;  %s845_s11 = sphi %s875_s11, %s1106_s11   ;;  %s841_s10 = sphi %s873_s10, %s1105_s10   ;;  %s837_s9 = sphi %s871_s9, %s1104_s9  }
   0x7   : > { %p39_p0 = scmp.ne.s32.totalorder %s841_s10, %s837_s9  ;;  %p1089_p1 = scmp.eq.s32.totalorder %s892_s13, 0 }
   0x8   : > { %p90_p3 = scmp.eq.s32.totalorder %s510_s14, 3  ;;  %p511_p5 = scmp.ge.s32.totalorder %s849_s12, 1 }
   0x9   : > { %p901_p4 = por %p1089_p1, %p39_p0  ;;  %p97_p7 = scmp.lt.s32.totalorder %s849_s12, 5 }
   0xa   : > { %p906_p6 = por %p90_p3, %p39_p0  ;;  %s851_s18 = smov [#allocation5]  }
   0xb   : > { %s1092_s15 = scalar_select %p901_p4, 1, 0 }
   0xc   : > { %s1093_s16 = scalar_select %p906_p6, 1, 0 }
   0xd   : > { %p911_p8 = pnand %p511_p5, %p97_p7  ;;  %s109_s19 = sshll.u32 %s851_s18, 4  ;;  %s110_s19 = int_to_ptr.vmem [resolvable:$true] %s109_s19 }
   0xe   : > { %s924_s21 = sadd.s32 1, %s849_s12   ;;  %s26_s22 = sadd.s32 1, %s845_s11 }
   0xf   : > { %s1094_s17 = scalar_select %p911_p8, 1, 0 }
  0x10   : > { %p670_p9 = pneg %p911_p8  ;;  %s23_s23 = ssub.s32 %s849_s12, %s924_s21 }
  0x11   : > { %s721_s26 = scalar_lea.hbm %s1087_s1, 2048 }
  0x12   : > { %p919_p10 = pnand %p670_p9, %p1089_p1  ;;  %p722_p11 = scmp.ne.s32.totalorder %s1087_s1, %s721_s26 }
  0x13   : > { %p728_p3 = scmp.lt.u32.totalorder %s721_s26, %s1087_s1 }
  0x14   : > { %p723_p12 = pneg %p919_p10 }
  0x16   : > { %p724_p13 = pnand %p723_p12, %p722_p11 }
  0x18   : > { %p725_p0 = pneg %p724_p13 }
  0x1a   : > { %p730_p5 = pnand %p728_p3, %p725_p0 }
  0x1c   : > { %733 = shalt.err (!%p730_p5)
}
  0x1d   : > { %s734_s3 = scalar_lea.vmem %s110_s19, 2048  ;;  %p742_p2 = scmp.lt.s32.totalorder %s110_s19, %s110_s19 }
  0x1e   : > { %p735_p7 = scmp.ne.s32.totalorder %s110_s19, %s734_s3  ;;  %p743_p6 = scmp.lt.s32.totalorder %s734_s3, %s734_s3 }
  0x20   : > { %p737_p9 = pnand %p735_p7, %p723_p12  ;;  %p744_p4 = por %p743_p6, %p742_p2 }
  0x22   : > { %p738_p1 = pneg %p737_p9 }
  0x24   : > { %p745_p8 = pnand %p744_p4, %p738_p1 }
  0x26   : > { %748 = shalt.err (!%p745_p8)
}
  0x27   : > { %s852_s4 = smov 128   ;;  %s853_s5 = smov 8  }
  0x28   : > { %673 = dma.hbm_to_vmem [thread:$0]  (!%p919_p10), %s1087_s1, 2048, %s110_s19, [#allocation6], %s852_s4, %s852_s4, %s853_s5  }
  0x29   : > { %p24_p1 = scmp.eq.s32.totalorder %s23_s23, 0  ;;  %p33_p2 = scmp.ne.s32.totalorder %s845_s11, %s841_s10 }
  0x2a   : > { %p34_p4 = scmp.eq.s32.totalorder %s849_s12, 0  ;;  %p683_p6 = scmp.lt.s32.totalorder %s849_s12, 4 }
  0x2b   : > { %s953_s8 = scalar_select %p24_p1, %s845_s11, %s26_s22  }
  0x2c   : > { %p35_p8 = por %p34_p4, %p33_p2  ;;  %p1096_p11 = scmp.eq.s32.totalorder %s892_s13, 3 }
  0x2d   : > { %s123_s18 = sand.u32 1, %s845_s11   ;;  %s525_s20 = sshll.u32 %s849_s12, 11 }
  0x2e   : > { %p957_p12 = por %p1096_p11, %p33_p2  ;;  %s514_s24 = sshll.u32 %s123_s18, 7 }
  0x2f   : > { %s966_s27 = scalar_lea.hbm %s1086_s0, %s525_s20  ;;  %s127_s19 = scalar_lea.vmem [#allocation2], %s514_s24 }
  0x30   : > { %s134_s22 = sshll.u32 %s127_s19, 4  ;;  %p968_p10 = pnand %p683_p6, %p35_p8  ;;  %s972_s22 = int_to_ptr.vmem [resolvable:$true] %s134_s22 }
  0x31   : > { %s974_s28 = scalar_lea.sflag [#allocation3], %s123_s18  ;;  %s749_s29 = scalar_lea.hbm %s966_s27, 2048 }
  0x32   : > { %p750_p13 = scmp.ne.s32.totalorder %s966_s27, %s749_s29  ;;  %p751_p0 = pneg %p968_p10 }
  0x33   : > { %s754_s6 = scalar_lea.hbm %s1086_s0, 8192  ;;  %p755_p7 = scmp.lt.u32.totalorder %s966_s27, %s1086_s0 }
  0x34   : > { %p752_p3 = pnand %p751_p0, %p750_p13  ;;  %p756_p9 = scmp.lt.u32.totalorder %s754_s6, %s749_s29 }
  0x35   : > { %p758_p2 = scmp.lt.u32.totalorder %s749_s29, %s966_s27 }
  0x36   : > { %p753_p5 = pneg %p752_p3  ;;  %p757_p1 = por %p756_p9, %p755_p7 }
  0x38   : > { %p759_p4 = por %p758_p2, %p757_p1 }
  0x3a   : > { %p760_p6 = pnand %p759_p4, %p753_p5 }
  0x3c   : > { %763 = shalt.err (!%p760_p6)
}
  0x3d   : > { %s764_s18 = scalar_lea.vmem %s972_s22, 2048  ;;  %s854_s24 = smov [#allocation2]  }
  0x3e   : > { %p765_p8 = scmp.ne.s32.totalorder %s972_s22, %s764_s18  ;;  %s769_s25 = sshll.u32 %s854_s24, 4  ;;  %s770_s25 = int_to_ptr.vmem [resolvable:$false] %s769_s25 }
  0x3f   : > { %s771_s26 = scalar_lea.vmem %s770_s25, 4096  ;;  %p772_p3 = scmp.lt.s32.totalorder %s972_s22, %s770_s25 }
  0x40   : > { %p767_p11 = pnand %p765_p8, %p751_p0  ;;  %p773_p7 = scmp.lt.s32.totalorder %s771_s26, %s764_s18 }
  0x42   : > { %p768_p13 = pneg %p767_p11  ;;  %p774_p9 = por %p773_p7, %p772_p3 }
  0x44   : > { %p775_p1 = pnand %p774_p9, %p768_p13 }
  0x46   : > { %778 = shalt.err (!%p775_p1)
}
  0x47   : > { %677 = dma.hbm_to_vmem [thread:$0]  (!%p968_p10), %s966_s27, 2048, %s972_s22, %s974_s28, %s852_s4, %s852_s4, %s853_s5  }
  0x48   : > { %p1099_p0 = scmp.ne.s32.totalorder %s1094_s17, 0 }
  0x49   : > { %s1008_s19 = sand.u32 (!%p1099_p0), 1, %s841_s10   ;;  %p1100_p5 = scmp.ne.s32.totalorder (!%p1099_p0), %s1092_s15, 0 }
  0x4a   : > { %146 = sbr.rel (%p1099_p0) target bundleno = 394 (0x18a), region = 28  ;;  %s518_s29 = sshll.u32 (!%p1099_p0), %s1008_s19, 7 }
  0x4b   : > { %s149_s30 = scalar_lea.sflag (!%p1099_p0), [#allocation3], %s1008_s19  ;;  %s1012_s3 = scalar_lea.vmem (!%p1099_p0), [#allocation2], %s518_s29 }
  0x51   : > { %824 = dma.done.wait (%p1100_p5), %s149_s30, 2048  }
  0x52   : > { %826 = vsyncadd (%p1100_p5), %s149_s30, 4294965248  ;;  %p1101_p10 = scmp.eq.s32.totalorder %s892_s13, 0 }
  0x54   : > { %828 = dma.done.wait (%p1101_p10), [#allocation6], 2048   ;;  %p1102_p2 = pmov %p1101_p10 }
  0x55   : > { %v194_v0 = vld [vmem:[#allocation5] sm:$0xff]  ;;  %v195_v1 = vld [vmem:[#allocation5 + $0x8] sm:$0xff]  ;;  %v196_v2 = vld [vmem:[#allocation5 + $0x10] sm:$0xff]  ;;  %s520_s15 = sshll.u32 %s1008_s19, 1  ;;  %s522_s17 = sshll.u32 %s892_s13, 5  ;;  %vm413_vm0 = vcmask 1040384  }
  0x56   : > { %830 = vsyncadd (%p1102_p2), [#allocation6], 4294965248  ;;  %v614_v3 = vpack.c.bf16 %v195_v1, %v194_v0  ;;  %v197_v4 = vld [vmem:[#allocation5 + $0x18] sm:$0xff]  ;;  %v198_v6 = vld [vmem:[#allocation5 + $0x20] sm:$0xff]  ;;  %s176_s4 = scalar_lea.vmem [#allocation7], %s520_s15  ;;  %s1043_s23 = scalar_lea.hbm %s1088_s2, %s522_s17 }
  0x57   : > { %v618_v5 = vpack.c.bf16 %v197_v4, %v196_v2  ;;  %v199_v7 = vld [vmem:[#allocation5 + $0x28] sm:$0xff]  ;;  %v178_v9 = vld [vmem:[%s1012_s3] sm:$0xff]  ;;  %v200_v10 = vld [vmem:[#allocation5 + $0x30] sm:$0xff]  ;;  %s430_s5 = sshll.u32 %s176_s4, 4  ;;  %s417_s28 = scalar_lea.sflag [#allocation4], %s1008_s19  ;;  %s1045_s5 = int_to_ptr.vmem [resolvable:$true] %s430_s5 }
  0x58   : > { %615 = vmatprep.subr.bf16.mxu0 %v614_v3  ;;  %646 = vmatprep.subr.bf16.mxu1 %v614_v3  ;;  %v622_v8 = vpack.c.bf16 %v199_v7, %v198_v6  ;;  %v201_v11 = vld [vmem:[#allocation5 + $0x38] sm:$0xff]  ;;  %v186_v12 = vld [vmem:[%s1012_s3 + $0x40] sm:$0xff]  ;;  %v203_v15 = vld [vmem:[#allocation5 + $0x48] sm:$0xff]  ;;  %s779_s6 = scalar_lea.vmem %s1045_s5, 32  ;;  %s855_s13 = smov [#allocation7]  }
  0x59   : > { %617 = vmatpush3.bf16.msra.mxu0 %v614_v3  ;;  %654 = vmatpush3.bf16.msra.mxu1 %v614_v3  ;;  %v626_v13 = vpack.c.bf16 %v201_v11, %v200_v10  ;;  %v202_v14 = vld [vmem:[#allocation5 + $0x40] sm:$0xff]  ;;  %v204_v17 = vld [vmem:[#allocation5 + $0x50] sm:$0xff]  ;;  %v205_v18 = vld [vmem:[#allocation5 + $0x58] sm:$0xff]  ;;  %p780_p4 = scmp.ne.s32.totalorder %s1045_s5, %s779_s6  ;;  %s783_s7 = sshll.u32 %s855_s13, 4  ;;  %s784_s7 = int_to_ptr.vmem [resolvable:$false] %s783_s7 }
  0x5a   : > { %619 = vmatprep.subr.bf16.mxu0 %v618_v5  ;;  %647 = vmatprep.subr.bf16.mxu1 %v618_v5  ;;  %v630_v16 = vpack.c.bf16 %v203_v15, %v202_v14  ;;  %v634_v19 = vpack.c.bf16 %v205_v18, %v204_v17  ;;  %v206_v20 = vld [vmem:[#allocation5 + $0x60] sm:$0xff]  ;;  %v207_v21 = vld [vmem:[#allocation5 + $0x68] sm:$0xff]  ;;  %v208_v23 = vld [vmem:[#allocation5 + $0x70] sm:$0xff]  ;;  %s785_s20 = scalar_lea.vmem %s784_s7, 64  ;;  %p786_p11 = scmp.lt.s32.totalorder %s1045_s5, %s784_s7 }
  0x5b   : > { %590 = vmatprep.mubr.f32.mxu0 %v178_v9  ;;  %602 = vmatprep.mubr.f32.mxu1 %v186_v12  ;;  %v638_v22 = vpack.c.bf16 %v207_v21, %v206_v20  ;;  %v209_v24 = vld [vmem:[#allocation5 + $0x78] sm:$0xff]  ;;  %v179_v26 = vld [vmem:[%s1012_s3 + $0x8] sm:$0xff]  ;;  %v180_v28 = vld [vmem:[%s1012_s3 + $0x10] sm:$0xff]  ;;  %p781_p6 = pnand %p780_p4, %p957_p12  ;;  %p787_p13 = scmp.lt.s32.totalorder %s785_s20, %s779_s6 }
  0x5c   : > { %v642_v25 = vpack.c.bf16 %v209_v24, %v208_v23  ;;  %v187_v27 = vld [vmem:[%s1012_s3 + $0x48] sm:$0xff]  ;;  %v188_v29 = vld [vmem:[%s1012_s3 + $0x50] sm:$0xff]  ;;  %v181_v30 = vld [vmem:[%s1012_s3 + $0x18] sm:$0xff] }
  0x5d   : > { %621 = vmatpush3.bf16.msra.mxu0 %v618_v5  ;;  %655 = vmatpush3.bf16.msra.mxu1 %v618_v5  ;;  %v189_v31 = vld [vmem:[%s1012_s3 + $0x58] sm:$0xff]  ;;  %v182_v32 = vld [vmem:[%s1012_s3 + $0x20] sm:$0xff]  ;;  %v183_v34 = vld [vmem:[%s1012_s3 + $0x28] sm:$0xff]  ;;  %p782_p8 = pneg %p781_p6  ;;  %p788_p3 = por %p787_p13, %p786_p11 }
  0x5e   : > { %623 = vmatprep.subr.bf16.mxu0 %v622_v8  ;;  %648 = vmatprep.subr.bf16.mxu1 %v622_v8  ;;  %v190_v33 = vld [vmem:[%s1012_s3 + $0x60] sm:$0xff]  ;;  %v191_v35 = vld [vmem:[%s1012_s3 + $0x68] sm:$0xff]  ;;  %v184_v36 = vld [vmem:[%s1012_s3 + $0x30] sm:$0xff] }
  0x5f   : > { %v192_v37 = vld [vmem:[%s1012_s3 + $0x70] sm:$0xff]  ;;  %v185_v38 = vld [vmem:[%s1012_s3 + $0x38] sm:$0xff]  ;;  %p789_p7 = pnand %p788_p3, %p782_p8 }
  0x60   : > { %v193_v39 = vld [vmem:[%s1012_s3 + $0x78] sm:$0xff] }
  0x61   : > { %625 = vmatpush3.bf16.msra.mxu0 %v622_v8  ;;  %656 = vmatpush3.bf16.msra.mxu1 %v622_v8 }
  0x62   : > { %627 = vmatprep.subr.bf16.mxu0 %v626_v13  ;;  %649 = vmatprep.subr.bf16.mxu1 %v626_v13 }
  0x65   : > { %629 = vmatpush3.bf16.msra.mxu0 %v626_v13  ;;  %657 = vmatpush3.bf16.msra.mxu1 %v626_v13 }
  0x66   : > { %631 = vmatprep.subr.bf16.mxu0 %v630_v16  ;;  %650 = vmatprep.subr.bf16.mxu1 %v630_v16 }
  0x69   : > { %633 = vmatpush3.bf16.msra.mxu0 %v630_v16  ;;  %658 = vmatpush3.bf16.msra.mxu1 %v630_v16 }
  0x6a   : > { %635 = vmatprep.subr.bf16.mxu0 %v634_v19  ;;  %651 = vmatprep.subr.bf16.mxu1 %v634_v19 }
  0x6d   : > { %637 = vmatpush3.bf16.msra.mxu0 %v634_v19  ;;  %659 = vmatpush3.bf16.msra.mxu1 %v634_v19 }
  0x6e   : > { %639 = vmatprep.subr.bf16.mxu0 %v638_v22  ;;  %652 = vmatprep.subr.bf16.mxu1 %v638_v22 }
  0x71   : > { %641 = vmatpush3.bf16.msra.mxu0 %v638_v22  ;;  %660 = vmatpush3.bf16.msra.mxu1 %v638_v22 }
  0x72   : > { %643 = vmatprep.subr.bf16.mxu0 %v642_v25  ;;  %653 = vmatprep.subr.bf16.mxu1 %v642_v25 }
  0x75   : > { %645 = vmatpush3.bf16.msra.mxu0 %v642_v25  ;;  %661 = vmatpush3.bf16.msra.mxu1 %v642_v25 }
  0x78   : > { %591 = vmatmul.mubr.f32.vlgmr.msra.gmra.mrb[0].mxu0 %v179_v26  ;;  %603 = vmatmul.mubr.f32.vlgmr.msra.gmra.mrb[0].mxu1 %v187_v27 }
  0x79   : > { %593 = vmatprep.mubr.f32.mxu0 %v180_v28  ;;  %605 = vmatprep.mubr.f32.mxu1 %v188_v29 }
  0x7c   : > { %594 = vmatmul.mubr.f32.gmra.mrb[2].mxu0 %v181_v30  ;;  %606 = vmatmul.mubr.f32.gmra.mrb[2].mxu1 %v189_v31 }
  0x7d   : > { %596 = vmatprep.mubr.f32.mxu0 %v182_v32  ;;  %608 = vmatprep.mubr.f32.mxu1 %v190_v33 }
  0x80   : > { %597 = vmatmul.mubr.f32.gmra.mrb[4].mxu0 %v183_v34  ;;  %609 = vmatmul.mubr.f32.gmra.mrb[4].mxu1 %v191_v35 }
  0x81   : > { %599 = vmatprep.mubr.f32.mxu0 %v184_v36  ;;  %611 = vmatprep.mubr.f32.mxu1 %v192_v37 }
  0x84   : > { %600 = vmatmul.mubr.f32.gmra.mrb[6].mxu0 %v185_v38  ;;  %612 = vmatmul.mubr.f32.gmra.mrb[6].mxu1 %v193_v39 }
 0x14b   : > { %v592_v40 = vpop.f32.mrb[0].mxu0  ;;  %v604_v41 = vpop.f32.mrb[0].mxu1 }
 0x14c   : > { %v377_v42 = vmul.f32 %v592_v40, %v592_v40  ;;  %v276_v43 = vpop.f32.mrb[1].mxu0  ;;  %v316_v44 = vpop.f32.mrb[1].mxu1  ;;  %v385_v16 = vmul.f32 %v604_v41, %v604_v41 }
 0x14d   : > { %v355_v45 = vadd.f32 %v592_v40, %v276_v43  ;;  %v376_v46 = vmul.f32 %v276_v43, %v276_v43  ;;  %v384_v13 = vmul.f32 %v316_v44, %v316_v44 }
 0x14f   : > { %v392_v47 = vadd.f32 %v377_v42, %v376_v46  ;;  %v595_v48 = vpop.f32.mrb[2].mxu0  ;;  %v607_v49 = vpop.f32.mrb[2].mxu1 }
 0x150   : > { %v286_v50 = vpop.f32.mrb[3].mxu0  ;;  %v326_v51 = vpop.f32.mrb[3].mxu1  ;;  %v379_v54 = vmul.f32 %v595_v48, %v595_v48  ;;  %v387_v22 = vmul.f32 %v607_v49, %v607_v49 }
 0x151   : > { %v356_v52 = vadd.f32 %v355_v45, %v286_v50  ;;  %v378_v53 = vmul.f32 %v286_v50, %v286_v50  ;;  %v386_v19 = vmul.f32 %v326_v51, %v326_v51 }
 0x153   : > { %v393_v55 = vadd.f32 %v392_v47, %v378_v53  ;;  %v598_v56 = vpop.f32.mrb[4].mxu0  ;;  %v357_v57 = vadd.f32 %v595_v48, %v356_v52  ;;  %v610_v58 = vpop.f32.mrb[4].mxu1 }
 0x154   : > { %v296_v59 = vpop.f32.mrb[5].mxu0  ;;  %v336_v60 = vpop.f32.mrb[5].mxu1  ;;  %v381_v0 = vmul.f32 %v598_v56, %v598_v56  ;;  %v389_v28 = vmul.f32 %v610_v58, %v610_v58 }
 0x155   : > { %v358_v61 = vadd.f32 %v357_v57, %v296_v59  ;;  %v380_v62 = vmul.f32 %v296_v59, %v296_v59  ;;  %v394_v63 = vadd.f32 %v393_v55, %v379_v54  ;;  %v388_v25 = vmul.f32 %v336_v60, %v336_v60 }
 0x157   : > { %v395_v1 = vadd.f32 %v394_v63, %v380_v62  ;;  %v601_v2 = vpop.f32.mrb[6].mxu0  ;;  %v359_v3 = vadd.f32 %v598_v56, %v358_v61  ;;  %v613_v4 = vpop.f32.mrb[6].mxu1 }
 0x158   : > { %v306_v5 = vpop.f32.mrb[7].mxu0  ;;  %v346_v6 = vpop.f32.mrb[7].mxu1  ;;  %v383_v10 = vmul.f32 %v601_v2, %v601_v2  ;;  %v391_v34 = vmul.f32 %v613_v4, %v613_v4 }
 0x159   : > { %v360_v7 = vadd.f32 %v359_v3, %v306_v5  ;;  %v382_v8 = vmul.f32 %v306_v5, %v306_v5  ;;  %v396_v9 = vadd.f32 %v395_v1, %v381_v0  ;;  %v390_v31 = vmul.f32 %v346_v6, %v346_v6 }
 0x15b   : > { %v361_v11 = vadd.f32 %v601_v2, %v360_v7  ;;  %v397_v12 = vadd.f32 %v396_v9, %v382_v8 }
 0x15d   : > { %v398_v14 = vadd.f32 %v397_v12, %v383_v10  ;;  %v362_v15 = vadd.f32 %v361_v11, %v316_v44 }
 0x15f   : > { %v399_v17 = vadd.f32 %v398_v14, %v384_v13  ;;  %v363_v18 = vadd.f32 %v604_v41, %v362_v15 }
 0x161   : > { %v364_v20 = vadd.f32 %v363_v18, %v326_v51  ;;  %v400_v21 = vadd.f32 %v399_v17, %v385_v16 }
 0x163   : > { %v401_v23 = vadd.f32 %v400_v21, %v386_v19  ;;  %v365_v24 = vadd.f32 %v607_v49, %v364_v20 }
 0x165   : > { %v366_v26 = vadd.f32 %v365_v24, %v336_v60  ;;  %v402_v27 = vadd.f32 %v401_v23, %v387_v22 }
 0x167   : > { %v403_v29 = vadd.f32 %v402_v27, %v388_v25  ;;  %v367_v30 = vadd.f32 %v610_v58, %v366_v26 }
 0x169   : > { %v368_v32 = vadd.f32 %v367_v30, %v346_v6  ;;  %v404_v33 = vadd.f32 %v403_v29, %v389_v28 }
 0x16b   : > { %v369_v35 = vadd.f32 %v613_v4, %v368_v32  ;;  %v405_v36 = vadd.f32 %v404_v33, %v390_v31 }
 0x16d   : > { %v370_v37 = vrot.slane %v369_v35, 4  ;;  %v406_v38 = vadd.f32 %v405_v36, %v391_v34 }
 0x16f   : > { %v371_v39 = vadd.f32 %v370_v37, %v369_v35  ;;  %v407_v40 = vrot.slane %v406_v38, 4 }
 0x171   : > { %v372_v41 = vrot.slane %v371_v39, 2  ;;  %v408_v42 = vadd.f32 %v407_v40, %v406_v38 }
 0x173   : > { %v373_v43 = vadd.f32 %v372_v41, %v371_v39  ;;  %v409_v44 = vrot.slane %v408_v42, 2 }
 0x175   : > { %v374_v45 = vrot.slane %v373_v43, 1  ;;  %v410_v46 = vadd.f32 %v409_v44, %v408_v42 }
 0x177   : > { %v411_v47 = vrot.slane %v410_v46, 1  ;;  %v375_v48 = vadd.f32 %v374_v45, %v373_v43 }
 0x179   : > { %v412_v49 = vadd.f32 %v411_v47, %v410_v46 }
 0x17b   : > { %v414_v50 = vsel %vm413_vm0, %v375_v48, %v412_v49 }
 0x17c   : > { %415 = vst [vmem:[%s176_s4] sm:$0x3] %v414_v50 }
 0x17d   : > { %792 = shalt.err (!%p789_p7)
}
 0x17e   : > { %s793_s18 = scalar_lea.hbm %s1043_s23, 32  ;;  %s797_s26 = scalar_lea.hbm %s1088_s2, 128 }
 0x17f   : > { %p794_p9 = scmp.ne.s32.totalorder %s1043_s23, %s793_s18  ;;  %p798_p5 = scmp.lt.u32.totalorder %s1043_s23, %s1088_s2 }
 0x180   : > { %p799_p10 = scmp.lt.u32.totalorder %s797_s26, %s793_s18  ;;  %p801_p4 = scmp.lt.u32.totalorder %s793_s18, %s1043_s23 }
 0x181   : > { %p795_p1 = pnand %p794_p9, %p957_p12 }
 0x182   : > { %p800_p2 = por %p799_p10, %p798_p5 }
 0x183   : > { %p796_p0 = pneg %p795_p1 }
 0x184   : > { %p802_p6 = por %p801_p4, %p800_p2 }
 0x186   : > { %p803_p8 = pnand %p802_p6, %p796_p0 }
 0x188   : > { %806 = shalt.err (!%p803_p8)
}
 0x189   : > { %668 = dma.vmem_to_hbm [thread:$0]  (%p957_p12), %s1045_s5, 32, %s1043_s23, %s417_s28  }
 0x18a PF: > { %p685_p11 = scmp.ge.s32.totalorder %s849_s12, 2  ;;  %s442_s30 = sand.u32 1, %s837_s9  }
 0x18b   : > { %p1103_p13 = scmp.ne.s32.totalorder %s1093_s16, 0  ;;  %s443_s3 = scalar_lea.sflag [#allocation4], %s442_s30 }
 0x18d   : > { %p679_p3 = pnand %p685_p11, %p1103_p13 }
 0x18f   : > { %832 = dma.done.wait (!%p679_p3), %s443_s3, 32  }
 0x190   : > { %834 = vsyncadd (!%p679_p3), %s443_s3, 4294967264  ;;  %p16_p7 = scmp.ge.s32.totalorder %s924_s21, 6   ;;  %s1104_s9 = smov %s841_s10 }
 0x191   : > { %s1105_s10 = smov %s845_s11  ;;  %s1106_s11 = smov %s953_s8 }
 0x192   : > { %s1107_s12 = smov %s924_s21  ;;  %18 = sbr.rel (!%p16_p7) target bundleno = 6 (0x6), region = 77 }
 0x199   :  { %448 = vsyncpa [#allocation3], 1 }
 0x19a   :  { %450 = vsyncpa [#allocation3 + $0x1], 1 }
 0x19b   :  { %451 = vsyncpa [#allocation6], 1 }
 0x19c   :  { %452 = vsyncpa [#allocation4], 1 }
 0x19d   :  { %454 = vsyncpa [#allocation4 + $0x1], 1 }

</bundles_post_ra>
